<compile_context>
chip_gen: v6e
topology: v6e:2x2x1
jax: 0.10.0
libtpu: 0.0.40
codegen_flags: <defaults>
</compile_context>

<pallas_src>
import jax
import jax.numpy as jnp
from jax import lax
from jax.experimental import pallas as pl
from jax.experimental.pallas import tpu as pltpu


def _round_up(a, m):
    return ((a + m - 1) // m) * m


def receiver_kernel(inp_ref, xex_ref, wt_ref, b_ref, out_ref):
    # inp_ref: (TM, F)  flattened candidate rows            (bf16 or f32)
    # xex_ref: (TM, L)  per-row message embedding x[r // C] (f32)
    # wt_ref:  (F, L)   fc1 weight, pre-transposed          (bf16 or f32)
    # b_ref:   (1, L)   fc1 bias                            (f32)
    # out_ref: (1, TM)  energies, lane-dense                (f32)
    logits = jnp.dot(inp_ref[...], wt_ref[...],
                     preferred_element_type=jnp.float32)          # (TM, L) f32, MXU
    embedded = jnp.tanh(logits + b_ref[...])                      # (TM, L) f32, VPU/EUP
    prod = embedded * xex_ref[...]                                # (TM, L) f32, VPU
    # Contract L on the MXU: ones(1,L) . prod^T -> (1, TM). Rows land on lanes,
    # so the store is a single unmasked lane-dense write.
    ones_row = jnp.ones((1, prod.shape[1]), jnp.float32)
    energies = lax.dot_general(ones_row, prod,
                               (((1,), (1,)), ((), ())),
                               preferred_element_type=jnp.float32)  # (1, TM)
    out_ref[...] = energies.astype(out_ref.dtype)


def receiver_forward(x, _input, w, b, *, use_bf16=False, tm=None):
    """x: (B, L); _input: (B, C, F); w: (L, F) torch convention; b: (L,)."""
    B, C, F = _input.shape
    L = x.shape[-1]
    M = B * C

    if tm is None:
        # Multiple of 256 (also 128-aligned for v5e); single step for small M.
        tm = min(512, _round_up(M, 256))
    M_pad = _round_up(M, tm)
    G = M_pad // tm

    in_dtype = jnp.bfloat16 if use_bf16 else jnp.float32

    inp_flat = jnp.asarray(_input, jnp.float32).reshape(M, F).astype(in_dtype)
    inp_flat = jnp.pad(inp_flat, ((0, M_pad - M), (0, 0)))
    # xex[r] = x[r // C]; zero padding makes padded rows contribute 0 energy.
    xex = jnp.repeat(jnp.asarray(x, jnp.float32), C, axis=0)
    xex = jnp.pad(xex, ((0, M_pad - M), (0, 0)))
    wt = jnp.asarray(w, jnp.float32).T.astype(in_dtype)       # (F, L)
    b2 = jnp.asarray(b, jnp.float32).reshape(1, L)

    in_bytes = 2 if use_bf16 else 4
    # Rough double-buffered VMEM estimate with generous headroom; capped below
    # the v7x physical 64 MiB so the explicit limit is valid on every generation.
    est = (2 * (tm * F * in_bytes + tm * L * 4 + tm * 4)
           + 2 * (F * L * in_bytes + L * 4))
    vmem_limit = int(min(64 << 20, max(8 << 20, 4 * est)))

    grid_spec = pltpu.PrefetchScalarGridSpec(
        num_scalar_prefetch=0,
        grid=(G,),
        in_specs=[
            pl.BlockSpec((tm, F), lambda i: (i, 0)),   # candidate rows
            pl.BlockSpec((tm, L), lambda i: (i, 0)),   # expanded message rows
            pl.BlockSpec((F, L), lambda i: (0, 0)),    # weight (VMEM-resident)
            pl.BlockSpec((1, L), lambda i: (0, 0)),    # bias   (VMEM-resident)
        ],
        out_specs=pl.BlockSpec((1, tm), lambda i: (i, 0)),
    )

    out = pl.pallas_call(
        receiver_kernel,
        out_shape=jax.ShapeDtypeStruct((G, tm), jnp.float32),
        grid_spec=grid_spec,
        compiler_params=pltpu.CompilerParams(
            dimension_semantics=("parallel",),
            vmem_limit_bytes=vmem_limit),
    )(inp_flat, xex, wt, b2)

    energies = out.reshape(M_pad)[:M].reshape(B, C)
    # Match torch's `energies.squeeze()` (drops size-1 dims, e.g. B==1 or C==1).
    return jnp.squeeze(energies)


def receiver_reference(x, _input, w, b):
    embedded = jnp.tanh(jnp.einsum("bcf,lf->bcl", _input, w) + b)
    return jnp.squeeze(jnp.einsum("bcl,bl->bc", embedded, x))


if __name__ == "__main__":
    # Small shapes consistent with the forward pass (images=False):
    B, C, F, L = 2, 8, 16, 32   # batch, candidates, n_features, linear_units

    key = jax.random.PRNGKey(0)
    k_x, k_in, k_w, k_b = jax.random.split(key, 4)

    x = jax.random.normal(k_x, (B, L), dtype=jnp.float32)
    _input = jax.random.normal(k_in, (B, C, F), dtype=jnp.float32)
    # Deterministic fc1 params (PyTorch Linear convention: weight (L, F), bias (L,))
    w = jax.random.normal(k_w, (L, F), dtype=jnp.float32) * (1.0 / jnp.sqrt(F))
    b = jax.random.normal(k_b, (L,), dtype=jnp.float32) * 0.01

    ref = receiver_reference(x, _input, w, b)

    # f32 path: tight match against the pure-JAX reference.
    energies = jax.block_until_ready(receiver_forward(x, _input, w, b))
    assert energies.shape == (B, C)
    assert jnp.allclose(energies, ref, atol=1e-5, rtol=1e-5)

    # bf16-input path (v6e/v7x HBM/MXU optimization): f32 accumulation, loose tol.
    energies_bf16 = jax.block_until_ready(
        receiver_forward(x, _input, w, b, use_bf16=True))
    assert energies_bf16.shape == (B, C)
    assert jnp.allclose(energies_bf16, ref, atol=2e-1, rtol=1e-1)

    print("KERNEL_OK")
</pallas_src>

<mosaic_0001>
module attributes {stable_mosaic.version = 11 : i64} {
  func.func @receiver_kernel(%arg0: i32, %arg1: memref<256x16xf32, #tpu.memory_space<vmem>>, %arg2: memref<256x32xf32, #tpu.memory_space<vmem>>, %arg3: memref<16x32xf32, #tpu.memory_space<vmem>>, %arg4: memref<1x32xf32, #tpu.memory_space<vmem>>, %arg5: memref<1x256xf32, #tpu.memory_space<vmem>>) attributes {dimension_semantics = [#tpu.dimension_semantics<parallel>], iteration_bounds = array<i64: 1>, scalar_prefetch = 0 : i64, scratch_operands = 0 : i64, tpu.core_type = #tpu.core_type<tc>, window_params = [{transform_indices = @transform_0, window_bounds = array<i64: 256, 16>}, {transform_indices = @transform_1, window_bounds = array<i64: 256, 32>}, {pipeline_mode = #tpu.pipeline_mode<synchronous>, transform_indices = @transform_2, window_bounds = array<i64: 16, 32>}, {pipeline_mode = #tpu.pipeline_mode<synchronous>, transform_indices = @transform_3, window_bounds = array<i64: 1, 32>}, {transform_indices = @transform_4, window_bounds = array<i64: 1, 256>}]} {
    %c0 = arith.constant 0 : index
    %c0_0 = arith.constant 0 : index
    %0 = vector.load %arg1[%c0, %c0_0] : memref<256x16xf32, #tpu.memory_space<vmem>>, vector<256x16xf32>
    %c0_1 = arith.constant 0 : index
    %c0_2 = arith.constant 0 : index
    %1 = vector.load %arg3[%c0_1, %c0_2] : memref<16x32xf32, #tpu.memory_space<vmem>>, vector<16x32xf32>
    %cst = arith.constant dense<0.000000e+00> : vector<256x32xf32>
    %2 = tpu.matmul %0, %1, %cst {dimension_numbers = #tpu.dot_dimension_numbers<[1], [0], [0], [1], [0, 0, 1, 1], [], []>} : vector<256x16xf32>, vector<16x32xf32>, vector<256x32xf32> -> vector<256x32xf32>
    %c0_3 = arith.constant 0 : index
    %c0_4 = arith.constant 0 : index
    %3 = vector.load %arg4[%c0_3, %c0_4] : memref<1x32xf32, #tpu.memory_space<vmem>>, vector<1x32xf32>
    %4 = vector.broadcast %3 : vector<1x32xf32> to vector<256x32xf32>
    %5 = arith.addf %2, %4 : vector<256x32xf32>
    %6 = math.tanh %5 : vector<256x32xf32>
    %c0_5 = arith.constant 0 : index
    %c0_6 = arith.constant 0 : index
    %7 = vector.load %arg2[%c0_5, %c0_6] : memref<256x32xf32, #tpu.memory_space<vmem>>, vector<256x32xf32>
    %8 = arith.mulf %6, %7 : vector<256x32xf32>
    %cst_7 = arith.constant 1.000000e+00 : f32
    %9 = vector.broadcast %cst_7 : f32 to vector<1x32xf32>
    %cst_8 = arith.constant dense<0.000000e+00> : vector<1x256xf32>
    %10 = tpu.matmul %9, %8, %cst_8 {dimension_numbers = #tpu.dot_dimension_numbers<[1], [1], [0], [0], [0, 0, 1, 0], [], []>} : vector<1x32xf32>, vector<256x32xf32>, vector<1x256xf32> -> vector<1x256xf32>
    %c0_9 = arith.constant 0 : index
    %c0_10 = arith.constant 0 : index
    %11 = vector.load %arg5[%c0_9, %c0_10] : memref<1x256xf32, #tpu.memory_space<vmem>>, vector<1x256xf32>
    tpu.vector_store %arg5[%c0_9, %c0_10], %10 {strides = array<i32>} : memref<1x256xf32, #tpu.memory_space<vmem>>, vector<1x256xf32>,
    return
  }
  func.func @transform_0(%arg0: i32) -> (i32, i32) {
    %c0_i32 = arith.constant 0 : i32
    %c0_i32_0 = arith.constant 0 : i32
    return %arg0, %c0_i32 : i32, i32
  }
  func.func @transform_1(%arg0: i32) -> (i32, i32) {
    %c0_i32 = arith.constant 0 : i32
    %c0_i32_0 = arith.constant 0 : i32
    return %arg0, %c0_i32 : i32, i32
  }
  func.func @transform_2(%arg0: i32) -> (i32, i32) {
    %c0_i32 = arith.constant 0 : i32
    %c0_i32_0 = arith.constant 0 : i32
    %c0_i32_1 = arith.constant 0 : i32
    return %c0_i32, %c0_i32_0 : i32, i32
  }
  func.func @transform_3(%arg0: i32) -> (i32, i32) {
    %c0_i32 = arith.constant 0 : i32
    %c0_i32_0 = arith.constant 0 : i32
    %c0_i32_1 = arith.constant 0 : i32
    return %c0_i32, %c0_i32_0 : i32, i32
  }
  func.func @transform_4(%arg0: i32) -> (i32, i32) {
    %c0_i32 = arith.constant 0 : i32
    %c0_i32_0 = arith.constant 0 : i32
    return %arg0, %c0_i32 : i32, i32
  }
}

</mosaic_0001>

<bundles_post_ra>
// kernel: tpu_custom_call.1
= control target key start
LH: loop header
LB: loop body
LE: loop exit
PB: predicated region body
PF: predicated region fallthrough
CT: control target
= control target key end

     0   :  { %vm59_vm0 = vcmask 130048   ;;  %s1348_s0 = inlined_call_operand.vmem [shape: f32[256,16], index: 0, kind: input, shape index: {}]   ;;  %s1349_s1 = inlined_call_operand.vmem [shape: f32[256,32], index: 1, kind: input, shape index: {}]   ;;  %s1350_s2 = inlined_call_operand.vmem [shape: f32[16,32], index: 2, kind: input, shape index: {}]   ;;  %s1351_s3 = inlined_call_operand.vmem [shape: f32[1,32], index: 3, kind: input, shape index: {}]   ;;  %s1352_s4 = inlined_call_operand.hbm [shape: f32[1,256], index: 4, kind: output, shape index: {}]  }
   0x1   :  { %v51_v0 = vld [vmem:[%s1350_s2 + $0x8] sm:$0xff]  ;;  %v50_v1 = vld [vmem:[%s1350_s2] sm:$0xff]  ;;  %v20_v4 = vld [vmem:[%s1348_s0 + $0x10] sm:$0xff] }
   0x2   :  { %v18_v2 = vld [vmem:[%s1348_s0] sm:$0xff]  ;;  %819 = vmatprep.subr.mxu0 %v51_v0  ;;  %v19_v3 = vld [vmem:[%s1348_s0 + $0x8] sm:$0xff]  ;;  %v21_v5 = vld [vmem:[%s1348_s0 + $0x18] sm:$0xff] }
   0x3   :  { %823 = vmatprep.mubr.msk.f32.mxu0 %vm59_vm0, %v18_v2  ;;  %820 = vmatpush3.msra.mxu0 %v51_v0  ;;  %v22_v6 = vld [vmem:[%s1348_s0 + $0x20] sm:$0xff]  ;;  %v23_v7 = vld [vmem:[%s1348_s0 + $0x28] sm:$0xff]  ;;  %v24_v8 = vld [vmem:[%s1348_s0 + $0x30] sm:$0xff] }
   0x4   :  { %821 = vmatprep.subr.mxu0 %v50_v1 }
   0x5   :  { %822 = vmatpush3.msra.mxu0 %v50_v1 }
   0x6   :  { %824 = vmatmul.mubr.msk.f32.vlgmr.msra.gmra.mxu0 %vm59_vm0, %v19_v3 }
   0x7   :  { %826 = vmatprep.mubr.msk.f32.mxu0 %vm59_vm0, %v20_v4 }
   0xa   :  { %827 = vmatmul.mubr.msk.f32.gmra.mxu0 %vm59_vm0, %v21_v5 }
   0xb   :  { %829 = vmatprep.mubr.msk.f32.mxu0 %vm59_vm0, %v22_v6 }
   0xc   :  { %9 = vsyncpa [#allocation3], 0  ;;  %v25_v9 = vld [vmem:[%s1348_s0 + $0x38] sm:$0xff]  ;;  %v26_v10 = vld [vmem:[%s1348_s0 + $0x40] sm:$0xff]  ;;  %vm477_vm1 = vcmask 261120   ;;  %v960_v41 = vmov 1.0  }
   0xd   :  { %v27_v11 = vld [vmem:[%s1348_s0 + $0x48] sm:$0xff]  ;;  %v28_v12 = vld [vmem:[%s1348_s0 + $0x50] sm:$0xff]  ;;  %v29_v13 = vld [vmem:[%s1348_s0 + $0x58] sm:$0xff]  ;;  %817 = vmatprep.mubr.msk.f32.mxu1 %vm477_vm1, %v960_v41 }
   0xe   :  { %830 = vmatmul.mubr.msk.f32.gmra.mxu0 %vm59_vm0, %v23_v7  ;;  %v30_v14 = vld [vmem:[%s1348_s0 + $0x60] sm:$0xff]  ;;  %v31_v15 = vld [vmem:[%s1348_s0 + $0x68] sm:$0xff]  ;;  %v32_v16 = vld [vmem:[%s1348_s0 + $0x70] sm:$0xff] }
   0xf   :  { %832 = vmatprep.mubr.msk.f32.mxu0 %vm59_vm0, %v24_v8  ;;  %v33_v17 = vld [vmem:[%s1348_s0 + $0x78] sm:$0xff]  ;;  %v34_v18 = vld [vmem:[%s1348_s0 + $0x80] sm:$0xff]  ;;  %v35_v19 = vld [vmem:[%s1348_s0 + $0x88] sm:$0xff] }
  0x10   :  { %v36_v20 = vld [vmem:[%s1348_s0 + $0x90] sm:$0xff]  ;;  %v37_v21 = vld [vmem:[%s1348_s0 + $0x98] sm:$0xff]  ;;  %v38_v22 = vld [vmem:[%s1348_s0 + $0xa0] sm:$0xff] }
  0x11   :  { %v39_v23 = vld [vmem:[%s1348_s0 + $0xa8] sm:$0xff]  ;;  %v40_v24 = vld [vmem:[%s1348_s0 + $0xb0] sm:$0xff]  ;;  %v41_v25 = vld [vmem:[%s1348_s0 + $0xb8] sm:$0xff] }
  0x12   :  { %833 = vmatmul.mubr.msk.f32.gmra.mxu0 %vm59_vm0, %v25_v9  ;;  %v42_v26 = vld [vmem:[%s1348_s0 + $0xc0] sm:$0xff]  ;;  %v43_v27 = vld [vmem:[%s1348_s0 + $0xc8] sm:$0xff]  ;;  %v44_v28 = vld [vmem:[%s1348_s0 + $0xd0] sm:$0xff] }
  0x13   :  { %835 = vmatprep.mubr.msk.f32.mxu0 %vm59_vm0, %v26_v10  ;;  %v45_v29 = vld [vmem:[%s1348_s0 + $0xd8] sm:$0xff]  ;;  %v46_v30 = vld [vmem:[%s1348_s0 + $0xe0] sm:$0xff]  ;;  %v47_v31 = vld [vmem:[%s1348_s0 + $0xe8] sm:$0xff] }
  0x14   :  { %v48_v32 = vld [vmem:[%s1348_s0 + $0xf0] sm:$0xff]  ;;  %v49_v33 = vld [vmem:[%s1348_s0 + $0xf8] sm:$0xff]  ;;  %v1163_v0 = vld [vmem:[%s1351_s3] ss:$0 sm:$0xff] }
  0x16   :  { %836 = vmatmul.mubr.msk.f32.gmra.mxu0 %vm59_vm0, %v27_v11 }
  0x17   :  { %838 = vmatprep.mubr.msk.f32.mxu0 %vm59_vm0, %v28_v12 }
  0x1a   :  { %839 = vmatmul.mubr.msk.f32.gmra.mxu0 %vm59_vm0, %v29_v13 }
  0x1b   :  { %841 = vmatprep.mubr.msk.f32.mxu0 %vm59_vm0, %v30_v14  ;;  %v444_v14 = vld [vmem:[%s1349_s1 + $0xf8] sm:$0xff] }
  0x1e   :  { %842 = vmatmul.mubr.msk.f32.gmra.mxu0 %vm59_vm0, %v31_v15 }
  0x1f   :  { %844 = vmatprep.mubr.msk.f32.mxu0 %vm59_vm0, %v32_v16 }
  0x22   :  { %845 = vmatmul.mubr.msk.f32.gmra.mxu0 %vm59_vm0, %v33_v17  ;;  %v428_v17 = vld [vmem:[%s1349_s1 + $0x78] sm:$0xff] }
  0x23   :  { %847 = vmatprep.mubr.msk.f32.mxu0 %vm59_vm0, %v34_v18 }
  0x26   :  { %848 = vmatmul.mubr.msk.f32.gmra.mxu0 %vm59_vm0, %v35_v19  ;;  %v443_v19 = vld [vmem:[%s1349_s1 + $0xf0] sm:$0xff] }
  0x27   :  { %850 = vmatprep.mubr.msk.f32.mxu0 %vm59_vm0, %v36_v20 }
  0x2a   :  { %851 = vmatmul.mubr.msk.f32.gmra.mxu0 %vm59_vm0, %v37_v21 }
  0x2b   :  { %853 = vmatprep.mubr.msk.f32.mxu0 %vm59_vm0, %v38_v22 }
  0x2e   :  { %854 = vmatmul.mubr.msk.f32.gmra.mxu0 %vm59_vm0, %v39_v23 }
  0x2f   :  { %856 = vmatprep.mubr.msk.f32.mxu0 %vm59_vm0, %v40_v24 }
  0x32   :  { %857 = vmatmul.mubr.msk.f32.gmra.mxu0 %vm59_vm0, %v41_v25 }
  0x33   :  { %859 = vmatprep.mubr.msk.f32.mxu0 %vm59_vm0, %v42_v26 }
  0x36   :  { %860 = vmatmul.mubr.msk.f32.gmra.mxu0 %vm59_vm0, %v43_v27  ;;  %v427_v27 = vld [vmem:[%s1349_s1 + $0x70] sm:$0xff] }
  0x37   :  { %862 = vmatprep.mubr.msk.f32.mxu0 %vm59_vm0, %v44_v28 }
  0x3a   :  { %863 = vmatmul.mubr.msk.f32.gmra.mxu0 %vm59_vm0, %v45_v29  ;;  %v442_v29 = vld [vmem:[%s1349_s1 + $0xe8] sm:$0xff] }
  0x3b   :  { %865 = vmatprep.mubr.msk.f32.mxu0 %vm59_vm0, %v46_v30 }
  0x3e   :  { %866 = vmatmul.mubr.msk.f32.gmra.mxu0 %vm59_vm0, %v47_v31 }
  0x3f   :  { %868 = vmatprep.mubr.msk.f32.mxu0 %vm59_vm0, %v48_v32 }
  0x42   :  { %869 = vmatmul.mubr.msk.f32.gmra.mxu0 %vm59_vm0, %v49_v33 }
  0xc6   :  { %v1122_v34 = vpop.f32.mrf.mxu0 }
  0xc8   :  { %v1124_v35 = vpop.f32.mrf.mxu0 }
  0xca   :  { %v1126_v36 = vpop.f32.mrf.mxu0 }
  0xcc   :  { %v1128_v37 = vpop.f32.mrf.mxu0 }
  0xce   :  { %v1130_v38 = vpop.f32.mrf.mxu0 }
  0xd0   :  { %v1132_v39 = vpop.f32.mrf.mxu0 }
  0xd2   :  { %v1134_v40 = vpop.f32.mrf.mxu0 }
  0xd4   :  { %v1138_v42 = vpop.f32.mrf.mxu0 }
  0xd6   :  { %v1140_v43 = vpop.f32.mrf.mxu0 }
  0xd7   :  { %v268_v30 = vadd.f32 %v1140_v43, %v1163_v0 }
  0xd8   :  { %v1142_v44 = vpop.f32.mrf.mxu0 }
  0xd9   :  { %v263_v43 = vadd.f32 %v1163_v0, %v1142_v44  ;;  %v258_v44 = vadd.f32 %v1134_v40, %v1163_v0  ;;  %v253_v40 = vadd.f32 %v1163_v0, %v1138_v42  ;;  %v248_v42 = vadd.f32 %v1130_v38, %v1163_v0 }
  0xda   :  { %v840_v45 = vpop.f32.mrf.mxu0  ;;  %v243_v38 = vadd.f32 %v1163_v0, %v1132_v39  ;;  %v238_v39 = vadd.f32 %v1126_v36, %v1163_v0  ;;  %v233_v36 = vadd.f32 %v1163_v0, %v1128_v37  ;;  %v228_v37 = vadd.f32 %v1122_v34, %v1163_v0 }
  0xdb   :  { %v278_v13 = vadd.f32 %v840_v45, %v1163_v0  ;;  %v223_v34 = vadd.f32 %v1163_v0, %v1124_v35 }
  0xdc   :  { %v272_v46 = vpop.f32.mrf.mxu0 }
  0xdd   :  { %v273_v22 = vadd.f32 %v1163_v0, %v272_v46  ;;  %v426_v46 = vld [vmem:[%s1349_s1 + $0x68] sm:$0xff] }
  0xde   :  { %v843_v47 = vpop.f32.mrf.mxu0 }
  0xdf   :  { %v288_v9 = vadd.f32 %v843_v47, %v1163_v0 }
  0xe0   :  { %v282_v48 = vpop.f32.mrf.mxu0 }
  0xe1   :  { %v283_v11 = vadd.f32 %v1163_v0, %v282_v48  ;;  %v441_v48 = vld [vmem:[%s1349_s1 + $0xe0] sm:$0xff] }
  0xe2   :  { %v846_v49 = vpop.f32.mrf.mxu0 }
  0xe3   :  { %v298_v1 = vadd.f32 %v846_v49, %v1163_v0 }
  0xe4   :  { %v292_v50 = vpop.f32.mrf.mxu0 }
  0xe5   :  { %874 = vtanh.f32 %v298_v1  ;;  %v293_v5 = vadd.f32 %v1163_v0, %v292_v50 }
  0xe6   :  { %v1144_v51 = vpop.f32.mrf.mxu0 }
  0xe8   :  { %v1146_v52 = vpop.f32.mrf.mxu0 }
  0xea   :  { %v1148_v53 = vpop.f32.mrf.mxu0 }
  0xec   :  { %v1150_v54 = vpop.f32.mrf.mxu0 }
  0xee   :  { %v1152_v55 = vpop.f32.mrf.mxu0 }
  0xf0   :  { %v1154_v56 = vpop.f32.mrf.mxu0 }
  0xf2   :  { %v1156_v57 = vpop.f32.mrf.mxu0  ;;  %v875_v15 = vpop.eup %874 }
  0xf3   :  { %v460_v23 = vmul.f32 %v875_v15, %v428_v17 }
  0xf4   :  { %v1158_v58 = vpop.f32.mrf.mxu0 }
  0xf6   :  { %v861_v59 = vpop.f32.mrf.mxu0 }
  0xf7   :  { %v348_v25 = vadd.f32 %v861_v59, %v1163_v0  ;;  %v338_v59 = vadd.f32 %v1156_v57, %v1163_v0 }
  0xf8   :  { %v342_v60 = vpop.f32.mrf.mxu0 }
  0xf9   :  { %v343_v33 = vadd.f32 %v1163_v0, %v342_v60 }
  0xfa   :  { %v864_v61 = vpop.f32.mrf.mxu0 }
  0xfb   :  { %v358_v12 = vadd.f32 %v864_v61, %v1163_v0  ;;  %v425_v61 = vld [vmem:[%s1349_s1 + $0x60] sm:$0xff] }
  0xfc   :  { %v352_v62 = vpop.f32.mrf.mxu0 }
  0xfd   :  { %v353_v16 = vadd.f32 %v1163_v0, %v352_v62 }
  0xfe   :  { %v867_v63 = vpop.f32.mrf.mxu0 }
  0xff   :  { %v368_v7 = vadd.f32 %v867_v63, %v1163_v0  ;;  %v440_v63 = vld [vmem:[%s1349_s1 + $0xd8] sm:$0xff] }
 0x100   :  { %v362_v2 = vpop.f32.mrf.mxu0 }
 0x101   :  { %v363_v10 = vadd.f32 %v1163_v0, %v362_v2  ;;  %v333_v2 = vadd.f32 %v1163_v0, %v1158_v58 }
 0x102   :  { %v870_v3 = vpop.f32.mrf.mxu0 }
 0x103   :  { %v378_v4 = vadd.f32 %v870_v3, %v1163_v0 }
 0x104   :  { %v372_v6 = vpop.f32.mrf.mxu0 }
 0x105   :  { %876 = vtanh.f32 %v378_v4  ;;  %v373_v8 = vadd.f32 %v1163_v0, %v372_v6  ;;  %v424_v4 = vld [vmem:[%s1349_s1 + $0x58] sm:$0xff]  ;;  %v439_v6 = vld [vmem:[%s1349_s1 + $0xd0] sm:$0xff] }
 0x107   :  { %878 = vtanh.f32 %v373_v8  ;;  %v328_v8 = vadd.f32 %v1152_v55, %v1163_v0 }
 0x108   :  { %880 = vtanh.f32 %v293_v5 }
 0x109   :  { %882 = vtanh.f32 %v368_v7 }
 0x10a   :  { %884 = vtanh.f32 %v288_v9 }
 0x10b   :  { %886 = vtanh.f32 %v363_v10  ;;  %v423_v10 = vld [vmem:[%s1349_s1 + $0x50] sm:$0xff] }
 0x10c   :  { %888 = vtanh.f32 %v283_v11 }
 0x10d   :  { %890 = vtanh.f32 %v358_v12  ;;  %v438_v12 = vld [vmem:[%s1349_s1 + $0xc8] sm:$0xff] }
 0x10e   :  { %892 = vtanh.f32 %v278_v13 }
 0x10f   :  { %894 = vtanh.f32 %v353_v16  ;;  %v422_v16 = vld [vmem:[%s1349_s1 + $0x48] sm:$0xff] }
 0x110   :  { %896 = vtanh.f32 %v273_v22  ;;  %v421_v22 = vld [vmem:[%s1349_s1 + $0x40] sm:$0xff] }
 0x111   :  { %898 = vtanh.f32 %v348_v25 }
 0x112   :  { %v877_v18 = vpop.eup %876  ;;  %900 = vtanh.f32 %v268_v30  ;;  %v435_v30 = vld [vmem:[%s1349_s1 + $0xb0] sm:$0xff] }
 0x113   :  { %v476_v20 = vmul.f32 %v877_v18, %v444_v14  ;;  %902 = vtanh.f32 %v343_v33  ;;  %v323_v14 = vadd.f32 %v1163_v0, %v1154_v56  ;;  %v437_v18 = vld [vmem:[%s1349_s1 + $0xc0] sm:$0xff] }
 0x114   :  { %v879_v21 = vpop.eup %878  ;;  %904 = vtanh.f32 %v263_v43  ;;  %v303_v43 = vadd.f32 %v1163_v0, %v1146_v52 }
 0x115   :  { %v881_v24 = vpop.eup %880  ;;  %785 = vmatprep.subr.msk.mxu1 %vm477_vm1, %v476_v20  ;;  %v475_v26 = vmul.f32 %v879_v21, %v443_v19  ;;  %906 = vtanh.f32 %v338_v59  ;;  %v318_v20 = vadd.f32 %v1148_v53, %v1163_v0 }
 0x116   :  { %v883_v28 = vpop.eup %882  ;;  %786 = vmatpush3.xpose.msk.msra.mxu1 %vm477_vm1, %v460_v23  ;;  %v459_v31 = vmul.f32 %v881_v24, %v427_v27  ;;  %908 = vtanh.f32 %v258_v44  ;;  %v436_v24 = vld [vmem:[%s1349_s1 + $0xb8] sm:$0xff] }
 0x117   :  { %787 = vmatprep.subr.msk.mxu1 %vm477_vm1, %v475_v26  ;;  %v885_v32 = vpop.eup %884  ;;  %v474_v45 = vmul.f32 %v883_v28, %v442_v29  ;;  %910 = vtanh.f32 %v333_v2  ;;  %v313_v26 = vadd.f32 %v1163_v0, %v1150_v54  ;;  %v420_v28 = vld [vmem:[%s1349_s1 + $0x38] sm:$0xff] }
 0x118   :  { %v887_v47 = vpop.eup %886  ;;  %v458_v49 = vmul.f32 %v885_v32, %v426_v46  ;;  %912 = vtanh.f32 %v253_v40  ;;  %v308_v32 = vadd.f32 %v1144_v51, %v1163_v0  ;;  %v416_v2 = vld [vmem:[%s1349_s1 + $0x18] sm:$0xff] }
 0x119   :  { %v889_v50 = vpop.eup %888  ;;  %v473_v60 = vmul.f32 %v887_v47, %v441_v48  ;;  %914 = vtanh.f32 %v328_v8  ;;  %v434_v47 = vld [vmem:[%s1349_s1 + $0xa8] sm:$0xff] }
 0x11a   :  { %788 = vmatpush3.xpose.msk.msra.mxu1 %vm477_vm1, %v459_v31  ;;  %v891_v62 = vpop.eup %890  ;;  %v457_v57 = vmul.f32 %v889_v50, %v425_v61  ;;  %916 = vtanh.f32 %v248_v42  ;;  %v418_v50 = vld [vmem:[%s1349_s1 + $0x28] sm:$0xff] }
 0x11b   :  { %789 = vmatprep.subr.msk.mxu1 %vm477_vm1, %v474_v45  ;;  %v893_v1 = vpop.eup %892  ;;  %v472_v3 = vmul.f32 %v891_v62, %v440_v63  ;;  %918 = vtanh.f32 %v323_v14  ;;  %v419_v45 = vld [vmem:[%s1349_s1 + $0x30] sm:$0xff]  ;;  %v417_v63 = vld [vmem:[%s1349_s1 + $0x20] sm:$0xff]  ;;  %v430_v8 = vld [vmem:[%s1349_s1 + $0x88] sm:$0xff] }
 0x11c   :  { %v895_v5 = vpop.eup %894  ;;  %v456_v7 = vmul.f32 %v893_v1, %v424_v4  ;;  %920 = vtanh.f32 %v243_v38  ;;  %v431_v4 = vld [vmem:[%s1349_s1 + $0x90] sm:$0xff] }
 0x11d   :  { %v897_v58 = vpop.eup %896  ;;  %v471_v9 = vmul.f32 %v895_v5, %v439_v6  ;;  %922 = vtanh.f32 %v318_v20 }
 0x11e   :  { %790 = vmatpush3.xpose.msk.msra.mxu1 %vm477_vm1, %v458_v49  ;;  %v899_v11 = vpop.eup %898  ;;  %v455_v55 = vmul.f32 %v897_v58, %v423_v10  ;;  %924 = vtanh.f32 %v238_v39 }
 0x11f   :  { %791 = vmatprep.subr.msk.mxu1 %vm477_vm1, %v473_v60  ;;  %v901_v13 = vpop.eup %900  ;;  %v470_v15 = vmul.f32 %v899_v11, %v438_v12  ;;  %926 = vtanh.f32 %v313_v26  ;;  %v433_v60 = vld [vmem:[%s1349_s1 + $0xa0] sm:$0xff]  ;;  %v414_v12 = vld [vmem:[%s1349_s1 + $0x8] sm:$0xff] }
 0x120   :  { %v903_v17 = vpop.eup %902  ;;  %v454_v19 = vmul.f32 %v901_v13, %v422_v16  ;;  %928 = vtanh.f32 %v233_v36  ;;  %v413_v16 = vld [vmem:[%s1349_s1] sm:$0xff] }
 0x121   :  { %v905_v56 = vpop.eup %904  ;;  %v469_v21 = vmul.f32 %v903_v17, %v437_v18  ;;  %930 = vtanh.f32 %v308_v32  ;;  %v961_v18 = vmov 1966171168  }
 0x122   :  { %792 = vmatpush3.xpose.msk.msra.mxu1 %vm477_vm1, %v457_v57  ;;  %v907_v23 = vpop.eup %906  ;;  %v453_v53 = vmul.f32 %v905_v56, %v421_v22  ;;  %932 = vtanh.f32 %v228_v37  ;;  %v432_v57 = vld [vmem:[%s1349_s1 + $0x98] sm:$0xff]  ;;  %v652_v38 = vunpack.c.l.s4 %v961_v18 }
 0x123   :  { %793 = vmatprep.subr.msk.mxu1 %vm477_vm1, %v472_v3  ;;  %v909_v25 = vpop.eup %908  ;;  %v468_v27 = vmul.f32 %v907_v23, %v436_v24  ;;  %934 = vtanh.f32 %v303_v43 }
 0x124   :  { %v911_v29 = vpop.eup %910  ;;  %v452_v31 = vmul.f32 %v909_v25, %v420_v28  ;;  %936 = vtanh.f32 %v223_v34  ;;  %v653_v56 = vunpack.c.0.s8 %v652_v38 }
 0x125   :  { %v913_v54 = vpop.eup %912  ;;  %v467_v33 = vmul.f32 %v911_v29, %v435_v30 }
 0x126   :  { %794 = vmatpush3.xpose.msk.msra.mxu1 %vm477_vm1, %v456_v7  ;;  %v915_v46 = vpop.eup %914  ;;  %v451_v51 = vmul.f32 %v913_v54, %v419_v45  ;;  %v415_v7 = vld [vmem:[%s1349_s1 + $0x10] sm:$0xff] }
 0x127   :  { %795 = vmatprep.subr.msk.mxu1 %vm477_vm1, %v471_v9  ;;  %v917_v48 = vpop.eup %916  ;;  %v466_v49 = vmul.f32 %v915_v46, %v434_v47 }
 0x128   :  { %v919_v59 = vpop.eup %918  ;;  %v450_v61 = vmul.f32 %v917_v48, %v418_v50 }
 0x129   :  { %v921_v52 = vpop.eup %920  ;;  %v465_v62 = vmul.f32 %v919_v59, %v433_v60 }
 0x12a   :  { %796 = vmatpush3.xpose.msk.msra.mxu1 %vm477_vm1, %v455_v55  ;;  %v923_v44 = vpop.eup %922  ;;  %v449_v1 = vmul.f32 %v921_v52, %v417_v63  ;;  %v429_v55 = vld [vmem:[%s1349_s1 + $0x80] sm:$0xff]  ;;  %s962_s1 = smov [#allocation2]  }
 0x12b   :  { %797 = vmatprep.subr.msk.mxu1 %vm477_vm1, %v470_v15  ;;  %v925_v35 = vpop.eup %924  ;;  %v464_v0 = vmul.f32 %v923_v44, %v432_v57  ;;  %s677_s8 = sshll.u32 %s962_s1, 4  ;;  %s678_s8 = int_to_ptr.vmem [resolvable:$true] %s677_s8 }
 0x12c   :  { %v927_v3 = vpop.eup %926  ;;  %v448_v5 = vmul.f32 %v925_v35, %v416_v2  ;;  %s938_s9 = scalar_lea.vmem %s678_s8, 32  ;;  %p943_p1 = scmp.lt.s32.totalorder %s678_s8, %s678_s8 }
 0x12d   :  { %v929_v6 = vpop.eup %928  ;;  %v463_v40 = vmul.f32 %v927_v3, %v431_v4  ;;  %p939_p0 = scmp.ne.s32.totalorder %s678_s8, %s938_s9  ;;  %p944_p2 = scmp.lt.s32.totalorder %s938_s9, %s938_s9 }
 0x12e   :  { %798 = vmatpush3.xpose.msk.msra.mxu1 %vm477_vm1, %v454_v19  ;;  %v931_v58 = vpop.eup %930  ;;  %v447_v9 = vmul.f32 %v929_v6, %v415_v7  ;;  %v654_v19 = vlaneseq }
 0x12f   :  { %799 = vmatprep.subr.msk.mxu1 %vm477_vm1, %v469_v21  ;;  %v933_v10 = vpop.eup %932  ;;  %v462_v11 = vmul.f32 %v931_v58, %v430_v8  ;;  %p945_p3 = por %p944_p2, %p943_p1 }
 0x130   :  { %v935_v42 = vpop.eup %934  ;;  %v446_v13 = vmul.f32 %v933_v10, %v414_v12  ;;  %v655_v20 = vshrl.u32 %v654_v19, 7  ;;  %vm668_vm2 = vcmp.lt.s32.totalorder %v654_v19, 256 }
 0x131   :  { %v937_v14 = vpop.eup %936  ;;  %v461_v15 = vmul.f32 %v935_v42, %v429_v55  ;;  %p946_p4 = pnand %p945_p3, %p939_p0 }
 0x132   :  { %800 = vmatpush3.xpose.msk.msra.mxu1 %vm477_vm1, %v453_v53  ;;  %v445_v17 = vmul.f32 %v937_v14, %v413_v16  ;;  %v656_v22 = vsub.s32 %v653_v56, %v655_v20 }
 0x133   :  { %801 = vmatprep.subr.msk.mxu1 %vm477_vm1, %v468_v27 }
 0x136   :  { %802 = vmatpush3.xpose.msk.msra.mxu1 %vm477_vm1, %v452_v31 }
 0x137   :  { %803 = vmatprep.subr.msk.mxu1 %vm477_vm1, %v467_v33 }
 0x13a   :  { %804 = vmatpush3.xpose.msk.msra.mxu1 %vm477_vm1, %v451_v51 }
 0x13b   :  { %805 = vmatprep.subr.msk.mxu1 %vm477_vm1, %v466_v49 }
 0x13e   :  { %806 = vmatpush3.xpose.msk.msra.mxu1 %vm477_vm1, %v450_v61 }
 0x13f   :  { %807 = vmatprep.subr.msk.mxu1 %vm477_vm1, %v465_v62 }
 0x142   :  { %808 = vmatpush3.xpose.msk.msra.mxu1 %vm477_vm1, %v449_v1 }
 0x143   :  { %809 = vmatprep.subr.msk.mxu1 %vm477_vm1, %v464_v0 }
 0x146   :  { %810 = vmatpush3.xpose.msk.msra.mxu1 %vm477_vm1, %v448_v5 }
 0x147   :  { %811 = vmatprep.subr.msk.mxu1 %vm477_vm1, %v463_v40 }
 0x14a   :  { %812 = vmatpush3.xpose.msk.msra.mxu1 %vm477_vm1, %v447_v9 }
 0x14b   :  { %813 = vmatprep.subr.msk.mxu1 %vm477_vm1, %v462_v11 }
 0x14e   :  { %814 = vmatpush3.xpose.msk.msra.mxu1 %vm477_vm1, %v446_v13 }
 0x14f   :  { %815 = vmatprep.subr.msk.mxu1 %vm477_vm1, %v461_v15 }
 0x152   :  { %816 = vmatpush3.xpose.msk.msra.mxu1 %vm477_vm1, %v445_v17 }
 0x155   :  { %818 = vmatmul.mubr.msk.f32.vlgmr.msra.gmra.mxu1 %vm477_vm1, %v960_v41 }
 0x215   :  { %v643_v21 = vpop.f32.mrf.mxu1 }
 0x217   :  { %v645_v23 = vpop.f32.mrf.mxu1 }
 0x218   :  { %v650_v24 = vcombine.low %v643_v21, %v645_v23 }
 0x21a   :  { %v657_v39 = vrot.slane %v650_v24, %v656_v22 }
 0x21c   :  { %v664_v53 = vrot.slane %v657_v39, %v656_v22 }
 0x21e   :  { %670 = vst.msk [vmem:[#allocation2] sm:$0x3] %vm668_vm2, %v664_v53 }
 0x21f   :  { %949 = shalt.err (!%p946_p4)
}
 0x220   :  { %680 = dma.vmem_to_hbm [thread:$0]  %s678_s8, 32, %s1352_s4, [#allocation3]  }
 0x221   :  { %958 = dma.done.wait [#allocation3], 32  }
 0x222   :  { %959 = vsyncadd [#allocation3], 4294967264 }
 0x223   :  { %684 = vsyncpa [#allocation3], 1 }

</bundles_post_ra>
